<compile_context>
chip_gen: v7x
topology: tpu7x:2x2x1
jax: 0.10.0
libtpu: 0.0.40
codegen_flags: <defaults>
</compile_context>

<pallas_src>
import jax
import jax.numpy as jnp
from jax import lax
from jax.experimental import pallas as pl
from jax.experimental.pallas import tpu as pltpu


def _round_up(x: int, m: int) -> int:
    return (x + m - 1) // m * m


def _linear_kernel(x_ref, w_ref, b_ref, o_ref):
    # x_ref : (TM, H)  bf16 activation tile
    # w_ref : (TN, H)  bf16 weight tile, PyTorch (classes, hidden) layout
    # b_ref : (1, TN)  f32 bias row tile
    # o_ref : (TM, TN) f32 output tile (lane-dense: TN is a multiple of 128)
    acc = lax.dot_general(
        x_ref[...], w_ref[...],
        dimension_numbers=(((1,), (1,)), ((), ())),   # contract on H (trans_b)
        preferred_element_type=jnp.float32)
    o_ref[...] = (acc + b_ref[...]).astype(o_ref.dtype)


def classifier_forward(x, weight, bias, *, tile_m=None, tile_n=None,
                       compute_dtype=jnp.bfloat16):
    """y = x @ weight.T + bias (nn.Linear forward) as a fused Pallas kernel.

    x:      (B, H)
    weight: (C, H)  -- PyTorch nn.Linear convention, NOT transposed here
    bias:   (C,)
    returns (B, C) in x.dtype
    """
    B, H = x.shape
    C, H2 = weight.shape
    assert H == H2, "hidden dim mismatch"
    out_dtype = x.dtype

    # --- lane-dense output: pad the class dimension to a multiple of 128 ---
    C_pad = _round_up(C, 128)
    if C_pad != C:
        weight = jnp.pad(weight, ((0, C_pad - C), (0, 0)))
        bias = jnp.pad(bias, (0, C_pad - C))
    b_row = bias.reshape(1, C_pad).astype(jnp.float32)

    # --- bf16 operands, f32 MXU accumulation ---
    x_c = x.astype(compute_dtype)
    w_c = weight.astype(compute_dtype)        # kept (C_pad, H): no transpose pass

    # --- tile selection ---
    if tile_n is None:
        # largest of {512, 256, 128} that divides C_pad (C_pad % 128 == 0 always)
        tile_n = 512 if C_pad % 512 == 0 else (256 if C_pad % 256 == 0 else 128)
    if tile_m is None:
        tile_m = min(256, _round_up(B, 8))
        # give the grid >=2 steps along M when possible (v7x megacore sharding)
        if pl.cdiv(B, tile_m) == 1 and B > 8:
            tile_m = max(8, _round_up((B + 1) // 2, 8))
    grid_m = pl.cdiv(B, tile_m)
    grid_n = C_pad // tile_n

    itemsize = jnp.dtype(compute_dtype).itemsize
    cost = pl.CostEstimate(
        flops=2 * B * H * C_pad,
        transcendentals=0,
        bytes_accessed=(B * H * itemsize + C_pad * H * itemsize
                        + C_pad * 4 + B * C_pad * jnp.dtype(out_dtype).itemsize))

    out = pl.pallas_call(
        _linear_kernel,
        out_shape=jax.ShapeDtypeStruct((B, C_pad), out_dtype),
        grid_spec=pltpu.PrefetchScalarGridSpec(
            num_scalar_prefetch=0,
            grid=(grid_m, grid_n),
            in_specs=[
                pl.BlockSpec((tile_m, H), lambda i, j: (i, 0)),   # x tile
                pl.BlockSpec((tile_n, H), lambda i, j: (j, 0)),   # W tile (C,H) layout
                pl.BlockSpec((1, tile_n), lambda i, j: (0, j)),   # bias tile
            ],
            out_specs=pl.BlockSpec((tile_m, tile_n), lambda i, j: (i, j)),
        ),
        compiler_params=pltpu.CompilerParams(
            dimension_semantics=("parallel", "parallel"),
            vmem_limit_bytes=64 * 1024 * 1024),
        cost_estimate=cost,
    )(x_c, w_c, b_row)

    return out[:, :C] if C_pad != C else out


def classifier_apply(x, weight, bias):
    """Dispatcher: tiny heads are faster as a plain XLA dot (per-step overhead
    dominates any custom kernel there); larger heads go to the Pallas kernel."""
    B, _ = x.shape
    C, _ = weight.shape
    if B * C < 128 * 128:
        return (x @ weight.T + bias).astype(x.dtype)
    return classifier_forward(x, weight, bias)


if __name__ == "__main__":
    key = jax.random.PRNGKey(0)

    # --- test 1: small classifier-head shapes (batch=8, hidden=32, classes=10) ---
    B, H, C = 8, 32, 10
    kx, kw, kb, key = jax.random.split(key, 4)
    bound = 1.0 / (H ** 0.5)
    x = jax.random.normal(kx, (B, H), dtype=jnp.float32)
    weight = jax.random.uniform(kw, (C, H), jnp.float32, -bound, bound)
    bias = jax.random.uniform(kb, (C,), jnp.float32, -bound, bound)

    y = classifier_forward(x, weight, bias)
    jax.block_until_ready(y)
    y_ref = x @ weight.T + bias
    assert y.shape == (B, C)
    assert jnp.allclose(y, y_ref, atol=2e-2, rtol=2e-2), "test 1 mismatch"

    # --- test 2: exercises M/N tiling (grid_m=2, grid_n=3) and class padding ---
    B2, H2_, C2 = 48, 96, 300
    kx, kw, kb, key = jax.random.split(key, 4)
    bound2 = 1.0 / (H2_ ** 0.5)
    x2 = jax.random.normal(kx, (B2, H2_), dtype=jnp.float32)
    w2 = jax.random.uniform(kw, (C2, H2_), jnp.float32, -bound2, bound2)
    b2 = jax.random.uniform(kb, (C2,), jnp.float32, -bound2, bound2)

    y2 = classifier_forward(x2, w2, b2)
    jax.block_until_ready(y2)
    y2_ref = x2 @ w2.T + b2
    assert y2.shape == (B2, C2)
    assert jnp.allclose(y2, y2_ref, atol=2e-2, rtol=2e-2), "test 2 mismatch"

    print("KERNEL_OK")
</pallas_src>

<mosaic_0001>
module attributes {stable_mosaic.version = 11 : i64} {
  func.func @_linear_kernel(%arg0: i32, %arg1: i32, %arg2: memref<8x32xbf16, #tpu.memory_space<vmem>>, %arg3: memref<128x32xbf16, #tpu.memory_space<vmem>>, %arg4: memref<1x128xf32, #tpu.memory_space<vmem>>, %arg5: memref<8x128xf32, #tpu.memory_space<vmem>>) attributes {dimension_semantics = [#tpu.dimension_semantics<parallel>, #tpu.dimension_semantics<parallel>], iteration_bounds = array<i64: 1, 1>, scalar_prefetch = 0 : i64, scratch_operands = 0 : i64, tpu.core_type = #tpu.core_type<tc>, window_params = [{transform_indices = @transform_0, window_bounds = array<i64: 8, 32>}, {transform_indices = @transform_1, window_bounds = array<i64: 128, 32>}, {transform_indices = @transform_2, window_bounds = array<i64: 1, 128>}, {transform_indices = @transform_3, window_bounds = array<i64: 8, 128>}]} {
    %c0 = arith.constant 0 : index
    %c0_0 = arith.constant 0 : index
    %0 = vector.load %arg2[%c0, %c0_0] : memref<8x32xbf16, #tpu.memory_space<vmem>>, vector<8x32xbf16>
    %c0_1 = arith.constant 0 : index
    %c0_2 = arith.constant 0 : index
    %1 = vector.load %arg3[%c0_1, %c0_2] : memref<128x32xbf16, #tpu.memory_space<vmem>>, vector<128x32xbf16>
    %cst = arith.constant dense<0.000000e+00> : vector<8x128xf32>
    %2 = tpu.matmul %0, %1, %cst {dimension_numbers = #tpu.dot_dimension_numbers<[1], [1], [0], [0], [0, 0, 1, 0], [], []>} : vector<8x32xbf16>, vector<128x32xbf16>, vector<8x128xf32> -> vector<8x128xf32>
    %c0_3 = arith.constant 0 : index
    %c0_4 = arith.constant 0 : index
    %3 = vector.load %arg4[%c0_3, %c0_4] : memref<1x128xf32, #tpu.memory_space<vmem>>, vector<1x128xf32>
    %4 = vector.broadcast %3 : vector<1x128xf32> to vector<8x128xf32>
    %5 = arith.addf %2, %4 : vector<8x128xf32>
    %c0_5 = arith.constant 0 : index
    %c0_6 = arith.constant 0 : index
    %6 = vector.load %arg5[%c0_5, %c0_6] : memref<8x128xf32, #tpu.memory_space<vmem>>, vector<8x128xf32>
    tpu.vector_store %arg5[%c0_5, %c0_6], %5 {strides = array<i32>} : memref<8x128xf32, #tpu.memory_space<vmem>>, vector<8x128xf32>,
    return
  }
  func.func @transform_0(%arg0: i32, %arg1: i32) -> (i32, i32) {
    %c0_i32 = arith.constant 0 : i32
    %c0_i32_0 = arith.constant 0 : i32
    return %arg0, %c0_i32 : i32, i32
  }
  func.func @transform_1(%arg0: i32, %arg1: i32) -> (i32, i32) {
    %c0_i32 = arith.constant 0 : i32
    %c0_i32_0 = arith.constant 0 : i32
    return %arg1, %c0_i32 : i32, i32
  }
  func.func @transform_2(%arg0: i32, %arg1: i32) -> (i32, i32) {
    %c0_i32 = arith.constant 0 : i32
    %c0_i32_0 = arith.constant 0 : i32
    return %c0_i32, %arg1 : i32, i32
  }
  func.func @transform_3(%arg0: i32, %arg1: i32) -> (i32, i32) {
    %c0_i32 = arith.constant 0 : i32
    return %arg0, %arg1 : i32, i32
  }
}

</mosaic_0001>

<bundles_post_ra>
// kernel: tpu_custom_call.1
= control target key start
LH: loop header
LB: loop body
LE: loop exit
PB: predicated region body
PF: predicated region fallthrough
CT: control target
= control target key end

     0   :  { %8 = vsyncpa [#allocation3], 0  ;;  %s436_s0 = inlined_call_operand.hbm [shape: bf16[8,32], index: 0, kind: input, shape index: {}]   ;;  %s437_s1 = inlined_call_operand.hbm [shape: bf16[128,32], index: 1, kind: input, shape index: {}]   ;;  %s438_s2 = inlined_call_operand.hbm [shape: f32[1,128], index: 2, kind: input, shape index: {}]   ;;  %s439_s3 = inlined_call_operand.hbm [shape: f32[8,128], index: 3, kind: output, shape index: {}]  }
   0x1   :  { %9 = vsyncpa [#allocation6], 0 }
   0x2   :  { %10 = vsyncpa [#allocation4], 0  ;;  %s351_s12 = smov [#allocation5]   ;;  %s257_s16 = scalar_lea.hbm %s437_s1, 1024 }
   0x3   :  { %s26_s13 = sshll.u32 %s351_s12, 4  ;;  %p258_p0 = scmp.ne.s32.totalorder %s437_s1, %s257_s16  ;;  %s27_s13 = int_to_ptr.vmem [resolvable:$true] %s26_s13 }
   0x4   :  { %p261_p1 = scmp.lt.u32.totalorder %s257_s16, %s437_s1 }
   0x6   :  { %p263_p2 = pnand %p261_p1, %p258_p0 }
   0x8   :  { %266 = shalt.err (!%p263_p2)
}
   0x9   :  { %s267_s21 = scalar_lea.vmem %s27_s13, 1024  ;;  %p272_p4 = scmp.lt.s32.totalorder %s27_s13, %s27_s13 }
   0xa   :  { %p268_p3 = scmp.ne.s32.totalorder %s27_s13, %s267_s21  ;;  %p273_p5 = scmp.lt.s32.totalorder %s267_s21, %s267_s21 }
   0xc   :  { %p274_p6 = por %p273_p5, %p272_p4 }
   0xe   :  { %p275_p7 = pnand %p274_p6, %p268_p3 }
  0x10   :  { %278 = shalt.err (!%p275_p7)
}
  0x11   :  { %s352_s22 = smov 64   ;;  %s353_s23 = smov 4  }
  0x12   :  { %32 = dma.hbm_to_vmem [thread:$0]  %s437_s1, 1024, %s27_s13, [#allocation6], %s352_s22, %s352_s22, %s353_s23  }
  0x13   :  { %s354_s26 = smov [#allocation2]   ;;  %s355_s28 = smov [#allocation7]  }
  0x14   :  { %s17_s27 = sshll.u32 %s354_s26, 4  ;;  %s39_s29 = sshll.u32 %s355_s28, 4  ;;  %s18_s27 = int_to_ptr.vmem [resolvable:$true] %s17_s27  ;;  %s40_s29 = int_to_ptr.vmem [resolvable:$true] %s39_s29 }
  0x15   :  { %s279_s5 = scalar_lea.hbm %s436_s0, 64 }
  0x16   :  { %p280_p8 = scmp.ne.s32.totalorder %s436_s0, %s279_s5  ;;  %p283_p9 = scmp.lt.u32.totalorder %s279_s5, %s436_s0 }
  0x18   :  { %p285_p10 = pnand %p283_p9, %p280_p8 }
  0x1a   :  { %288 = shalt.err (!%p285_p10)
}
  0x1b   :  { %s289_s1 = scalar_lea.vmem %s18_s27, 64  ;;  %p294_p12 = scmp.lt.s32.totalorder %s18_s27, %s18_s27 }
  0x1c   :  { %p290_p11 = scmp.ne.s32.totalorder %s18_s27, %s289_s1  ;;  %p295_p13 = scmp.lt.s32.totalorder %s289_s1, %s289_s1 }
  0x1e   :  { %p296_p0 = por %p295_p13, %p294_p12 }
  0x20   :  { %p297_p1 = pnand %p296_p0, %p290_p11 }
  0x22   :  { %300 = shalt.err (!%p297_p1)
}
  0x23   :  { %20 = dma.hbm_to_vmem [thread:$0]  %s436_s0, 64, %s18_s27, [#allocation3]  }
  0x24   :  { %s301_s14 = scalar_lea.hbm %s438_s2, 16 }
  0x25   :  { %p302_p2 = scmp.ne.s32.totalorder %s438_s2, %s301_s14  ;;  %p305_p3 = scmp.lt.u32.totalorder %s301_s14, %s438_s2 }
  0x27   :  { %p307_p4 = pnand %p305_p3, %p302_p2 }
  0x29   :  { %310 = shalt.err (!%p307_p4)
}
  0x2a   :  { %s311_s19 = scalar_lea.vmem %s40_s29, 16  ;;  %s315_s20 = scalar_lea.vmem %s40_s29, 32 }
  0x2b   :  { %p312_p5 = scmp.ne.s32.totalorder %s40_s29, %s311_s19  ;;  %p316_p6 = scmp.lt.s32.totalorder %s40_s29, %s40_s29 }
  0x2c   :  { %p317_p7 = scmp.lt.s32.totalorder %s315_s20, %s311_s19 }
  0x2e   :  { %p318_p8 = por %p317_p7, %p316_p6 }
  0x30   :  { %p319_p9 = pnand %p318_p8, %p312_p5 }
  0x32   :  { %322 = shalt.err (!%p319_p9)
}
  0x33   :  { %42 = dma.hbm_to_vmem [thread:$0]  %s438_s2, 16, %s40_s29, [#allocation6]  }
  0x34   :  { %345 = dma.done.wait [#allocation3], 64  }
  0x35   :  { %346 = vsyncadd [#allocation3], 4294967232 }
  0x36   :  { %347 = dma.done.wait [#allocation6], 1040  }
  0x37   :  { %348 = vsyncadd [#allocation6], 4294966256  ;;  %v356_v0 = vmov 0.0   ;;  %vm357_vm0 = vmmov 0   ;;  %vm117_vm1 = vcmask 261120   ;;  %v249_v1 = vld [vmem:[#allocation5] sm:$0xff]  }
  0x38   :  { %221 = vmatprep.subr.bf16.mxu0 %v356_v0  ;;  %237 = vmatprep.mubr.msk.bf16.mxu0 %vm357_vm0, %v356_v0  ;;  %v122_v2 = vsel %vm117_vm1, %v249_v1, 0  ;;  %v250_v3 = vld [vmem:[#allocation5 + $0x8] sm:$0xff]   ;;  %v251_v5 = vld [vmem:[#allocation5 + $0x10] sm:$0xff]   ;;  %v252_v7 = vld [vmem:[#allocation5 + $0x18] sm:$0xff]   ;;  %s358_s2 = smov [#allocation8]  }
  0x39   :  { %222 = vmatpush3.bf16.xpose.msra.mxu0 %v122_v2  ;;  %v125_v4 = vsel %vm117_vm1, %v250_v3, 0  ;;  %v128_v6 = vsel %vm117_vm1, %v251_v5, 0  ;;  %v131_v8 = vsel %vm117_vm1, %v252_v7, 0  ;;  %v253_v9 = vld [vmem:[#allocation5 + $0x20] sm:$0xff]   ;;  %v254_v11 = vld [vmem:[#allocation5 + $0x28] sm:$0xff]   ;;  %v255_v13 = vld [vmem:[#allocation5 + $0x30] sm:$0xff]  }
  0x3a   :  { %223 = vmatprep.subr.bf16.mxu0 %v356_v0  ;;  %v134_v10 = vsel %vm117_vm1, %v253_v9, 0  ;;  %v137_v12 = vsel %vm117_vm1, %v254_v11, 0  ;;  %v140_v14 = vsel %vm117_vm1, %v255_v13, 0  ;;  %v256_v15 = vld [vmem:[#allocation5 + $0x38] sm:$0xff]   ;;  %v202_v18 = vld [vmem:[#allocation7] ss:$0 sm:$0xff] }
  0x3b   :  { %v143_v16 = vsel %vm117_vm1, %v256_v15, 0  ;;  %v53_v17 = vld [vmem:[#allocation2] sm:$0xf]  ;;  %s192_s22 = sshll.u32 %s358_s2, 4  ;;  %s193_s22 = int_to_ptr.vmem [resolvable:$true] %s192_s22 }
  0x3c   :  { %s323_s23 = scalar_lea.vmem %s193_s22, 128  ;;  %p328_p11 = scmp.lt.s32.totalorder %s193_s22, %s193_s22 }
  0x3d   :  { %p324_p10 = scmp.ne.s32.totalorder %s193_s22, %s323_s23  ;;  %p329_p12 = scmp.lt.s32.totalorder %s323_s23, %s323_s23 }
  0x3f   :  { %p330_p13 = por %p329_p12, %p328_p11 }
  0x41   :  { %224 = vmatpush3.bf16.xpose.msra.mxu0 %v125_v4  ;;  %p331_p0 = pnand %p330_p13, %p324_p10 }
  0x42   :  { %225 = vmatprep.subr.bf16.mxu0 %v356_v0 }
  0x49   :  { %226 = vmatpush3.bf16.xpose.msra.mxu0 %v128_v6 }
  0x4a   :  { %227 = vmatprep.subr.bf16.mxu0 %v356_v0 }
  0x51   :  { %228 = vmatpush3.bf16.xpose.msra.mxu0 %v131_v8 }
  0x52   :  { %229 = vmatprep.subr.bf16.mxu0 %v356_v0 }
  0x59   :  { %230 = vmatpush3.bf16.xpose.msra.mxu0 %v134_v10 }
  0x5a   :  { %231 = vmatprep.subr.bf16.mxu0 %v356_v0 }
  0x61   :  { %232 = vmatpush3.bf16.xpose.msra.mxu0 %v137_v12 }
  0x62   :  { %233 = vmatprep.subr.bf16.mxu0 %v356_v0 }
  0x69   :  { %234 = vmatpush3.bf16.xpose.msra.mxu0 %v140_v14 }
  0x6a   :  { %235 = vmatprep.subr.bf16.mxu0 %v356_v0 }
  0x71   :  { %236 = vmatpush3.bf16.xpose.msra.mxu0 %v143_v16 }
  0x78   :  { %238 = vmatmul.mubr.msk.bf16.vlgmr.msra.gmra.mrb[0].mxu0 %vm117_vm1, %v53_v17 }
 0x14b   :  { %v179_v19 = vpop.f32.mrb[0].mxu0 }
 0x14c   :  { %v180_v20 = vadd.f32 %v202_v18, %v179_v19  ;;  %v239_v21 = vpop.f32.mrb[1].mxu0 }
 0x14d   :  { %v182_v22 = vpop.f32.mrb[2].mxu0 }
 0x14e   :  { %185 = vst [vmem:[#allocation8] sm:$0xff] %v180_v20  ;;  %v240_v23 = vpop.f32.mrb[3].mxu0 }
 0x14f   :  { %334 = shalt.err (!%p331_p0)
}
 0x150   :  { %s335_s26 = scalar_lea.hbm %s439_s3, 128 }
 0x151   :  { %p336_p1 = scmp.ne.s32.totalorder %s439_s3, %s335_s26  ;;  %p339_p2 = scmp.lt.u32.totalorder %s335_s26, %s439_s3 }
 0x153   :  { %p341_p3 = pnand %p339_p2, %p336_p1 }
 0x155   :  { %344 = shalt.err (!%p341_p3)
}
 0x156   :  { %195 = dma.vmem_to_hbm [thread:$0]  %s193_s22, 128, %s439_s3, [#allocation4]  }
 0x157   :  { %349 = dma.done.wait [#allocation4], 128  }
 0x158   :  { %350 = vsyncadd [#allocation4], 4294967168 }
 0x159   :  { %199 = vsyncpa [#allocation3], 1 }
 0x15a   :  { %200 = vsyncpa [#allocation6], 1 }
 0x15b   :  { %201 = vsyncpa [#allocation4], 1 }

</bundles_post_ra>
